<compile_context>
chip_gen: v5e
topology: v5e:2x2
jax: 0.10.0
libtpu: 0.0.40
codegen_flags: <defaults>
</compile_context>

<pallas_src>
import jax
import jax.numpy as jnp
from jax.experimental import pallas as pl
from jax.experimental.pallas import tpu as pltpu

LANE = 128
SUBLANE = 8


def _round_up(x, m):
    return ((x + m - 1) // m) * m


def _vmem_capacity_bytes():
    try:
        return int(pltpu.get_tpu_info().vmem_capacity_bytes)
    except Exception:
        return 128 << 20  # v5e/v6e physical VMEM; conservative default


def mlp_kernel(x_ref, w1_ref, b1_ref, w2_ref, b2_ref, w3_ref, b3_ref, o_ref):
    # Three MXU matmuls + bias + ReLU fused in one body; f32 accumulation.
    x = x_ref[...]
    h1 = jnp.dot(x, w1_ref[...], preferred_element_type=jnp.float32)
    h1 = jnp.maximum(h1 + b1_ref[...].astype(jnp.float32), 0.0)
    h2 = jnp.dot(h1.astype(w2_ref.dtype), w2_ref[...],
                 preferred_element_type=jnp.float32)
    h2 = jnp.maximum(h2 + b2_ref[...].astype(jnp.float32), 0.0)
    out = jnp.dot(h2.astype(w3_ref.dtype), w3_ref[...],
                  preferred_element_type=jnp.float32)
    out = out + b3_ref[...].astype(jnp.float32)
    o_ref[...] = out.astype(o_ref.dtype)


def prepare_params(params, *, compute_dtype=None):
    """Pad feature dims to TPU-friendly sizes ONCE (hoisted out of the per-call
    path) and optionally cast weights to a compute dtype (e.g. bfloat16)."""
    D_in, H = params["w1"].shape
    D_out = params["w3"].shape[1]
    D_in_p = _round_up(D_in, SUBLANE)   # first-matmul K: sublane-align only
    H_p = _round_up(H, LANE)            # lane-dense intermediates
    D_out_p = _round_up(D_out, LANE)    # lane-dense output stores

    def cvt(a):
        return a.astype(compute_dtype) if compute_dtype is not None else a

    padded = {
        "w1": jnp.pad(cvt(params["w1"]), ((0, D_in_p - D_in), (0, H_p - H))),
        "b1": jnp.pad(cvt(params["b1"]), ((0, 0), (0, H_p - H))),
        "w2": jnp.pad(cvt(params["w2"]), ((0, H_p - H), (0, H_p - H))),
        "b2": jnp.pad(cvt(params["b2"]), ((0, 0), (0, H_p - H))),
        "w3": jnp.pad(cvt(params["w3"]), ((0, H_p - H), (0, D_out_p - D_out))),
        "b3": jnp.pad(cvt(params["b3"]), ((0, 0), (0, D_out_p - D_out))),
    }
    dims = dict(d_in=D_in, h=H, d_out=D_out,
                d_in_p=D_in_p, h_p=H_p, d_out_p=D_out_p)
    return padded, dims


def mlp_forward(x, padded_params, dims, *, batch_tile=None):
    """x: (B, D_in).  padded_params/dims from prepare_params()."""
    B, D_in = x.shape
    assert D_in == dims["d_in"], "x feature dim does not match params"
    D_in_p, H_p, D_out_p = dims["d_in_p"], dims["h_p"], dims["d_out_p"]
    p = padded_params

    # Match dtypes so the dot stays on one MXU path (no silent promotion).
    w_dtype = p["w1"].dtype
    if x.dtype != w_dtype:
        x = x.astype(w_dtype)
    dt = x.dtype
    itemsize = jnp.dtype(dt).itemsize

    w_bytes = sum(int(p[k].size) * jnp.dtype(p[k].dtype).itemsize
                  for k in ("w1", "b1", "w2", "b2", "w3", "b3"))

    vmem_cap = _vmem_capacity_bytes()
    small_vmem = vmem_cap <= (64 << 20)  # v7x-like

    def _vmem_needed(bt):
        tiles = 2 * bt * (D_in_p + D_out_p) * itemsize          # double-buffered x/out tiles
        inter = 4 * bt * (2 * H_p + D_out_p)                    # f32 h1, h2, out temps
        return w_bytes + tiles + inter                          # weights single-buffered

    if batch_tile is None:
        B8 = _round_up(B, SUBLANE)
        cap = 256 if small_vmem else 512
        if small_vmem and B8 > 128:
            # Guarantee >= 2 grid steps so the parallel batch axis can shard
            # across v7x's two TensorCores.
            cap = min(cap, _round_up(-(-B8 // 2), SUBLANE))
        batch_tile = max(SUBLANE, min(B8, cap))
        budget = int(vmem_cap * 0.8)
        while _vmem_needed(batch_tile) > budget and batch_tile > SUBLANE:
            batch_tile = max(SUBLANE, _round_up(batch_tile // 2, SUBLANE))
    else:
        batch_tile = max(SUBLANE, _round_up(batch_tile, SUBLANE))

    vmem_needed = _vmem_needed(batch_tile)
    # TODO(synk): if the resident padded weights alone exceed the VMEM budget
    # (very large hidden dims, esp. on v7x's 64 MiB), stream w2/w3 row-blocks
    # over an extra "arbitrary" K-tiling grid axis (or pltpu.emit_pipeline) with
    # an f32 VMEM accumulator instead of keeping all weights resident.

    B_p = _round_up(B, batch_tile)
    xp = jnp.pad(x, ((0, B_p - B), (0, D_in_p - D_in)))
    grid = (B_p // batch_tile,)

    # Advisory cost estimate (weights counted once, per-array itemsizes).
    flops = 2 * B_p * (D_in_p * H_p + H_p * H_p + H_p * D_out_p)
    bytes_accessed = (B_p * D_in_p + B_p * D_out_p) * itemsize + w_bytes
    cost = pl.CostEstimate(flops=int(flops), transcendentals=0,
                           bytes_accessed=int(bytes_accessed))

    # Generation-aware scoped-VMEM request, with headroom under the physical cap.
    vmem_limit = None
    if vmem_needed > (16 << 20):
        if small_vmem:
            cap_bytes = vmem_cap - (8 << 20)
        else:
            cap_bytes = min(vmem_cap - (8 << 20), 112 << 20)
        vmem_limit = int(min(vmem_needed + (8 << 20), cap_bytes))

    def build_specs(single_buffer_weights):
        # Invariant weight/bias blocks: constant index_map => single-buffering
        # halves their VMEM footprint at zero perf cost.
        wkw = {"pipeline_mode": pl.Buffered(1)} if single_buffer_weights else {}
        in_specs = [
            pl.BlockSpec((batch_tile, D_in_p), lambda i: (i, 0)),        # x tile
            pl.BlockSpec((D_in_p, H_p), lambda i: (0, 0), **wkw),        # w1
            pl.BlockSpec((1, H_p), lambda i: (0, 0), **wkw),             # b1
            pl.BlockSpec((H_p, H_p), lambda i: (0, 0), **wkw),           # w2
            pl.BlockSpec((1, H_p), lambda i: (0, 0), **wkw),             # b2
            pl.BlockSpec((H_p, D_out_p), lambda i: (0, 0), **wkw),       # w3
            pl.BlockSpec((1, D_out_p), lambda i: (0, 0), **wkw),         # b3
        ]
        out_spec = pl.BlockSpec((batch_tile, D_out_p), lambda i: (i, 0))
        return in_specs, out_spec

    def run(single_buffer_weights):
        in_specs, out_spec = build_specs(single_buffer_weights)
        out = pl.pallas_call(
            mlp_kernel,
            out_shape=jax.ShapeDtypeStruct((B_p, D_out_p), dt),
            grid_spec=pltpu.PrefetchScalarGridSpec(
                num_scalar_prefetch=0,
                grid=grid,
                in_specs=in_specs,
                out_specs=out_spec,
            ),
            compiler_params=pltpu.CompilerParams(
                dimension_semantics=("parallel",),
                vmem_limit_bytes=vmem_limit,
            ),
            cost_estimate=cost,
        )(xp, p["w1"], p["b1"], p["w2"], p["b2"], p["w3"], p["b3"])
        return jax.block_until_ready(out)

    try:
        out = run(True)
    except Exception:
        # Fallback if this jax version rejects pipeline_mode=Buffered(1).
        out = run(False)

    return out[:B, :dims["d_out"]]


def init_params(key, input_dim, hidden_dim, output_dim):
    """Deterministic synthetic init matching nn.Linear shapes (weights transposed)."""
    ks = jax.random.split(key, 6)

    def lin(kw, kb, fan_in, fan_out):
        bound = 1.0 / (fan_in ** 0.5)
        w = jax.random.uniform(kw, (fan_in, fan_out), jnp.float32, -bound, bound)
        b = jax.random.uniform(kb, (1, fan_out), jnp.float32, -bound, bound)
        return w, b

    w1, b1 = lin(ks[0], ks[1], input_dim, hidden_dim)
    w2, b2 = lin(ks[2], ks[3], hidden_dim, hidden_dim)
    w3, b3 = lin(ks[4], ks[5], hidden_dim, output_dim)
    return {"w1": w1, "b1": b1, "w2": w2, "b2": b2, "w3": w3, "b3": b3}


def mlp_reference(x, p):
    h1 = jnp.maximum(x @ p["w1"] + p["b1"], 0.0)
    h2 = jnp.maximum(h1 @ p["w2"] + p["b2"], 0.0)
    return h2 @ p["w3"] + p["b3"]


if __name__ == "__main__":
    key = jax.random.PRNGKey(0)
    kx, kp = jax.random.split(key)

    batch, input_dim, hidden_dim, output_dim = 16, 32, 64, 16
    x = jax.random.normal(kx, (batch, input_dim), dtype=jnp.float32)
    params = init_params(kp, input_dim, hidden_dim, output_dim)
    ref = mlp_reference(x, params)

    # f32 path (exact zero-padding => tight tolerance vs. reference).
    pp32, dims32 = prepare_params(params)
    out32 = mlp_forward(x, pp32, dims32)
    out32 = jax.block_until_ready(out32)
    assert out32.shape == (batch, output_dim)
    assert jnp.allclose(out32, ref, atol=1e-4, rtol=1e-4), "f32 mismatch vs reference"

    # bf16 weights/activations path (fast MXU path), f32 accumulation in-kernel.
    ppbf, dimsbf = prepare_params(params, compute_dtype=jnp.bfloat16)
    outbf = mlp_forward(x, ppbf, dimsbf)
    outbf = jax.block_until_ready(outbf)
    assert outbf.shape == (batch, output_dim)
    assert jnp.allclose(outbf.astype(jnp.float32), ref, atol=0.15, rtol=0.05), \
        "bf16 mismatch vs reference"

    print("KERNEL_OK")
</pallas_src>

<mosaic_0001>
module attributes {stable_mosaic.version = 11 : i64} {
  func.func @mlp_kernel(%arg0: i32, %arg1: memref<16x32xf32, #tpu.memory_space<vmem>>, %arg2: memref<32x128xf32, #tpu.memory_space<vmem>>, %arg3: memref<1x128xf32, #tpu.memory_space<vmem>>, %arg4: memref<128x128xf32, #tpu.memory_space<vmem>>, %arg5: memref<1x128xf32, #tpu.memory_space<vmem>>, %arg6: memref<128x128xf32, #tpu.memory_space<vmem>>, %arg7: memref<1x128xf32, #tpu.memory_space<vmem>>, %arg8: memref<16x128xf32, #tpu.memory_space<vmem>>) attributes {dimension_semantics = [#tpu.dimension_semantics<parallel>], iteration_bounds = array<i64: 1>, scalar_prefetch = 0 : i64, scratch_operands = 0 : i64, tpu.core_type = #tpu.core_type<tc>, window_params = [{transform_indices = @transform_0, window_bounds = array<i64: 16, 32>}, {pipeline_mode = #tpu.pipeline_mode<synchronous>, transform_indices = @transform_1, window_bounds = array<i64: 32, 128>}, {pipeline_mode = #tpu.pipeline_mode<synchronous>, transform_indices = @transform_2, window_bounds = array<i64: 1, 128>}, {pipeline_mode = #tpu.pipeline_mode<synchronous>, transform_indices = @transform_3, window_bounds = array<i64: 128, 128>}, {pipeline_mode = #tpu.pipeline_mode<synchronous>, transform_indices = @transform_4, window_bounds = array<i64: 1, 128>}, {pipeline_mode = #tpu.pipeline_mode<synchronous>, transform_indices = @transform_5, window_bounds = array<i64: 128, 128>}, {pipeline_mode = #tpu.pipeline_mode<synchronous>, transform_indices = @transform_6, window_bounds = array<i64: 1, 128>}, {transform_indices = @transform_7, window_bounds = array<i64: 16, 128>}]} {
    %c0 = arith.constant 0 : index
    %c0_0 = arith.constant 0 : index
    %0 = vector.load %arg1[%c0, %c0_0] : memref<16x32xf32, #tpu.memory_space<vmem>>, vector<16x32xf32>
    %c0_1 = arith.constant 0 : index
    %c0_2 = arith.constant 0 : index
    %1 = vector.load %arg2[%c0_1, %c0_2] : memref<32x128xf32, #tpu.memory_space<vmem>>, vector<32x128xf32>
    %cst = arith.constant dense<0.000000e+00> : vector<16x128xf32>
    %2 = tpu.matmul %0, %1, %cst {dimension_numbers = #tpu.dot_dimension_numbers<[1], [0], [0], [1], [0, 0, 1, 1], [], []>} : vector<16x32xf32>, vector<32x128xf32>, vector<16x128xf32> -> vector<16x128xf32>
    %c0_3 = arith.constant 0 : index
    %c0_4 = arith.constant 0 : index
    %3 = vector.load %arg3[%c0_3, %c0_4] : memref<1x128xf32, #tpu.memory_space<vmem>>, vector<1x128xf32>
    %4 = vector.broadcast %3 : vector<1x128xf32> to vector<16x128xf32>
    %5 = arith.addf %2, %4 : vector<16x128xf32>
    %cst_5 = arith.constant 0.000000e+00 : f32
    %6 = vector.broadcast %cst_5 : f32 to vector<16x128xf32>
    %7 = arith.maximumf %5, %6 : vector<16x128xf32>
    %c0_6 = arith.constant 0 : index
    %c0_7 = arith.constant 0 : index
    %8 = vector.load %arg4[%c0_6, %c0_7] : memref<128x128xf32, #tpu.memory_space<vmem>>, vector<128x128xf32>
    %cst_8 = arith.constant dense<0.000000e+00> : vector<16x128xf32>
    %9 = tpu.matmul %7, %8, %cst_8 {dimension_numbers = #tpu.dot_dimension_numbers<[1], [0], [0], [1], [0, 0, 1, 1], [], []>} : vector<16x128xf32>, vector<128x128xf32>, vector<16x128xf32> -> vector<16x128xf32>
    %c0_9 = arith.constant 0 : index
    %c0_10 = arith.constant 0 : index
    %10 = vector.load %arg5[%c0_9, %c0_10] : memref<1x128xf32, #tpu.memory_space<vmem>>, vector<1x128xf32>
    %11 = vector.broadcast %10 : vector<1x128xf32> to vector<16x128xf32>
    %12 = arith.addf %9, %11 : vector<16x128xf32>
    %cst_11 = arith.constant 0.000000e+00 : f32
    %13 = vector.broadcast %cst_11 : f32 to vector<16x128xf32>
    %14 = arith.maximumf %12, %13 : vector<16x128xf32>
    %c0_12 = arith.constant 0 : index
    %c0_13 = arith.constant 0 : index
    %15 = vector.load %arg6[%c0_12, %c0_13] : memref<128x128xf32, #tpu.memory_space<vmem>>, vector<128x128xf32>
    %cst_14 = arith.constant dense<0.000000e+00> : vector<16x128xf32>
    %16 = tpu.matmul %14, %15, %cst_14 {dimension_numbers = #tpu.dot_dimension_numbers<[1], [0], [0], [1], [0, 0, 1, 1], [], []>} : vector<16x128xf32>, vector<128x128xf32>, vector<16x128xf32> -> vector<16x128xf32>
    %c0_15 = arith.constant 0 : index
    %c0_16 = arith.constant 0 : index
    %17 = vector.load %arg7[%c0_15, %c0_16] : memref<1x128xf32, #tpu.memory_space<vmem>>, vector<1x128xf32>
    %18 = vector.broadcast %17 : vector<1x128xf32> to vector<16x128xf32>
    %19 = arith.addf %16, %18 : vector<16x128xf32>
    %c0_17 = arith.constant 0 : index
    %c0_18 = arith.constant 0 : index
    %20 = vector.load %arg8[%c0_17, %c0_18] : memref<16x128xf32, #tpu.memory_space<vmem>>, vector<16x128xf32>
    tpu.vector_store %arg8[%c0_17, %c0_18], %19 {strides = array<i32>} : memref<16x128xf32, #tpu.memory_space<vmem>>, vector<16x128xf32>,
    return
  }
  func.func @transform_0(%arg0: i32) -> (i32, i32) {
    %c0_i32 = arith.constant 0 : i32
    %c0_i32_0 = arith.constant 0 : i32
    return %arg0, %c0_i32 : i32, i32
  }
  func.func @transform_1(%arg0: i32) -> (i32, i32) {
    %c0_i32 = arith.constant 0 : i32
    %c0_i32_0 = arith.constant 0 : i32
    %c0_i32_1 = arith.constant 0 : i32
    return %c0_i32, %c0_i32_0 : i32, i32
  }
  func.func @transform_2(%arg0: i32) -> (i32, i32) {
    %c0_i32 = arith.constant 0 : i32
    %c0_i32_0 = arith.constant 0 : i32
    %c0_i32_1 = arith.constant 0 : i32
    return %c0_i32, %c0_i32_0 : i32, i32
  }
  func.func @transform_3(%arg0: i32) -> (i32, i32) {
    %c0_i32 = arith.constant 0 : i32
    %c0_i32_0 = arith.constant 0 : i32
    %c0_i32_1 = arith.constant 0 : i32
    return %c0_i32, %c0_i32_0 : i32, i32
  }
  func.func @transform_4(%arg0: i32) -> (i32, i32) {
    %c0_i32 = arith.constant 0 : i32
    %c0_i32_0 = arith.constant 0 : i32
    %c0_i32_1 = arith.constant 0 : i32
    return %c0_i32, %c0_i32_0 : i32, i32
  }
  func.func @transform_5(%arg0: i32) -> (i32, i32) {
    %c0_i32 = arith.constant 0 : i32
    %c0_i32_0 = arith.constant 0 : i32
    %c0_i32_1 = arith.constant 0 : i32
    return %c0_i32, %c0_i32_0 : i32, i32
  }
  func.func @transform_6(%arg0: i32) -> (i32, i32) {
    %c0_i32 = arith.constant 0 : i32
    %c0_i32_0 = arith.constant 0 : i32
    %c0_i32_1 = arith.constant 0 : i32
    return %c0_i32, %c0_i32_0 : i32, i32
  }
  func.func @transform_7(%arg0: i32) -> (i32, i32) {
    %c0_i32 = arith.constant 0 : i32
    %c0_i32_0 = arith.constant 0 : i32
    return %arg0, %c0_i32 : i32, i32
  }
}

module attributes {stable_mosaic.version = 11 : i64} {
  func.func @mlp_kernel(%arg0: i32, %arg1: memref<16x32xf32, #tpu.memory_space<vmem>>, %arg2: memref<32x128xf32, #tpu.memory_space<vmem>>, %arg3: memref<1x128xf32, #tpu.memory_space<vmem>>, %arg4: memref<128x128xf32, #tpu.memory_space<vmem>>, %arg5: memref<1x128xf32, #tpu.memory_space<vmem>>, %arg6: memref<128x128xf32, #tpu.memory_space<vmem>>, %arg7: memref<1x128xf32, #tpu.memory_space<vmem>>, %arg8: memref<16x128xf32, #tpu.memory_space<vmem>>) attributes {dimension_semantics = [#tpu.dimension_semantics<parallel>], iteration_bounds = array<i64: 1>, scalar_prefetch = 0 : i64, scratch_operands = 0 : i64, tpu.core_type = #tpu.core_type<tc>, window_params = [{transform_indices = @transform_0, window_bounds = array<i64: 16, 32>}, {pipeline_mode = #tpu.pipeline_mode<synchronous>, transform_indices = @transform_1, window_bounds = array<i64: 32, 128>}, {pipeline_mode = #tpu.pipeline_mode<synchronous>, transform_indices = @transform_2, window_bounds = array<i64: 1, 128>}, {pipeline_mode = #tpu.pipeline_mode<synchronous>, transform_indices = @transform_3, window_bounds = array<i64: 128, 128>}, {pipeline_mode = #tpu.pipeline_mode<synchronous>, transform_indices = @transform_4, window_bounds = array<i64: 1, 128>}, {pipeline_mode = #tpu.pipeline_mode<synchronous>, transform_indices = @transform_5, window_bounds = array<i64: 128, 128>}, {pipeline_mode = #tpu.pipeline_mode<synchronous>, transform_indices = @transform_6, window_bounds = array<i64: 1, 128>}, {transform_indices = @transform_7, window_bounds = array<i64: 16, 128>}]} {
    %c0 = arith.constant 0 : index
    %c0_0 = arith.constant 0 : index
    %0 = vector.load %arg1[%c0, %c0_0] : memref<16x32xf32, #tpu.memory_space<vmem>>, vector<16x32xf32>
    %c0_1 = arith.constant 0 : index
    %c0_2 = arith.constant 0 : index
    %1 = vector.load %arg2[%c0_1, %c0_2] : memref<32x128xf32, #tpu.memory_space<vmem>>, vector<32x128xf32>
    %cst = arith.constant dense<0.000000e+00> : vector<16x128xf32>
    %2 = tpu.matmul %0, %1, %cst {dimension_numbers = #tpu.dot_dimension_numbers<[1], [0], [0], [1], [0, 0, 1, 1], [], []>} : vector<16x32xf32>, vector<32x128xf32>, vector<16x128xf32> -> vector<16x128xf32>
    %c0_3 = arith.constant 0 : index
    %c0_4 = arith.constant 0 : index
    %3 = vector.load %arg3[%c0_3, %c0_4] : memref<1x128xf32, #tpu.memory_space<vmem>>, vector<1x128xf32>
    %4 = vector.broadcast %3 : vector<1x128xf32> to vector<16x128xf32>
    %5 = arith.addf %2, %4 : vector<16x128xf32>
    %cst_5 = arith.constant 0.000000e+00 : f32
    %6 = vector.broadcast %cst_5 : f32 to vector<16x128xf32>
    %7 = arith.maximumf %5, %6 : vector<16x128xf32>
    %c0_6 = arith.constant 0 : index
    %c0_7 = arith.constant 0 : index
    %8 = vector.load %arg4[%c0_6, %c0_7] : memref<128x128xf32, #tpu.memory_space<vmem>>, vector<128x128xf32>
    %cst_8 = arith.constant dense<0.000000e+00> : vector<16x128xf32>
    %9 = tpu.matmul %7, %8, %cst_8 {dimension_numbers = #tpu.dot_dimension_numbers<[1], [0], [0], [1], [0, 0, 1, 1], [], []>} : vector<16x128xf32>, vector<128x128xf32>, vector<16x128xf32> -> vector<16x128xf32>
    %c0_9 = arith.constant 0 : index
    %c0_10 = arith.constant 0 : index
    %10 = vector.load %arg5[%c0_9, %c0_10] : memref<1x128xf32, #tpu.memory_space<vmem>>, vector<1x128xf32>
    %11 = vector.broadcast %10 : vector<1x128xf32> to vector<16x128xf32>
    %12 = arith.addf %9, %11 : vector<16x128xf32>
    %cst_11 = arith.constant 0.000000e+00 : f32
    %13 = vector.broadcast %cst_11 : f32 to vector<16x128xf32>
    %14 = arith.maximumf %12, %13 : vector<16x128xf32>
    %c0_12 = arith.constant 0 : index
    %c0_13 = arith.constant 0 : index
    %15 = vector.load %arg6[%c0_12, %c0_13] : memref<128x128xf32, #tpu.memory_space<vmem>>, vector<128x128xf32>
    %cst_14 = arith.constant dense<0.000000e+00> : vector<16x128xf32>
    %16 = tpu.matmul %14, %15, %cst_14 {dimension_numbers = #tpu.dot_dimension_numbers<[1], [0], [0], [1], [0, 0, 1, 1], [], []>} : vector<16x128xf32>, vector<128x128xf32>, vector<16x128xf32> -> vector<16x128xf32>
    %c0_15 = arith.constant 0 : index
    %c0_16 = arith.constant 0 : index
    %17 = vector.load %arg7[%c0_15, %c0_16] : memref<1x128xf32, #tpu.memory_space<vmem>>, vector<1x128xf32>
    %18 = vector.broadcast %17 : vector<1x128xf32> to vector<16x128xf32>
    %19 = arith.addf %16, %18 : vector<16x128xf32>
    %c0_17 = arith.constant 0 : index
    %c0_18 = arith.constant 0 : index
    %20 = vector.load %arg8[%c0_17, %c0_18] : memref<16x128xf32, #tpu.memory_space<vmem>>, vector<16x128xf32>
    tpu.vector_store %arg8[%c0_17, %c0_18], %19 {strides = array<i32>} : memref<16x128xf32, #tpu.memory_space<vmem>>, vector<16x128xf32>,
    return
  }
  func.func @transform_0(%arg0: i32) -> (i32, i32) {
    %c0_i32 = arith.constant 0 : i32
    %c0_i32_0 = arith.constant 0 : i32
    return %arg0, %c0_i32 : i32, i32
  }
  func.func @transform_1(%arg0: i32) -> (i32, i32) {
    %c0_i32 = arith.constant 0 : i32
    %c0_i32_0 = arith.constant 0 : i32
    %c0_i32_1 = arith.constant 0 : i32
    return %c0_i32, %c0_i32_0 : i32, i32
  }
  func.func @transform_2(%arg0: i32) -> (i32, i32) {
    %c0_i32 = arith.constant 0 : i32
    %c0_i32_0 = arith.constant 0 : i32
    %c0_i32_1 = arith.constant 0 : i32
    return %c0_i32, %c0_i32_0 : i32, i32
  }
  func.func @transform_3(%arg0: i32) -> (i32, i32) {
    %c0_i32 = arith.constant 0 : i32
    %c0_i32_0 = arith.constant 0 : i32
    %c0_i32_1 = arith.constant 0 : i32
    return %c0_i32, %c0_i32_0 : i32, i32
  }
  func.func @transform_4(%arg0: i32) -> (i32, i32) {
    %c0_i32 = arith.constant 0 : i32
    %c0_i32_0 = arith.constant 0 : i32
    %c0_i32_1 = arith.constant 0 : i32
    return %c0_i32, %c0_i32_0 : i32, i32
  }
  func.func @transform_5(%arg0: i32) -> (i32, i32) {
    %c0_i32 = arith.constant 0 : i32
    %c0_i32_0 = arith.constant 0 : i32
    %c0_i32_1 = arith.constant 0 : i32
    return %c0_i32, %c0_i32_0 : i32, i32
  }
  func.func @transform_6(%arg0: i32) -> (i32, i32) {
    %c0_i32 = arith.constant 0 : i32
    %c0_i32_0 = arith.constant 0 : i32
    %c0_i32_1 = arith.constant 0 : i32
    return %c0_i32, %c0_i32_0 : i32, i32
  }
  func.func @transform_7(%arg0: i32) -> (i32, i32) {
    %c0_i32 = arith.constant 0 : i32
    %c0_i32_0 = arith.constant 0 : i32
    return %arg0, %c0_i32 : i32, i32
  }
}

</mosaic_0001>

<bundles_post_ra>
// kernel: tpu_custom_call.1
= control target key start
LH: loop header
LB: loop body
LE: loop exit
PB: predicated region body
PF: predicated region fallthrough
CT: control target
= control target key end

     0   :  { %12 = vsyncpa [#allocation3], 0  ;;  %s487_s0 = inlined_call_operand.hbm [shape: f32[16,32], index: 0, kind: input, shape index: {}]   ;;  %s488_s1 = inlined_call_operand.hbm [shape: f32[32,128], index: 1, kind: input, shape index: {}]   ;;  %s489_s2 = inlined_call_operand.vmem [shape: f32[1,128], index: 2, kind: input, shape index: {}]   ;;  %s490_s3 = inlined_call_operand.hbm [shape: f32[128,128], index: 3, kind: input, shape index: {}]   ;;  %s491_s4 = inlined_call_operand.vmem [shape: f32[1,128], index: 4, kind: input, shape index: {}]   ;;  %s492_s5 = inlined_call_operand.hbm [shape: f32[128,128], index: 5, kind: input, shape index: {}]   ;;  %s493_s6 = inlined_call_operand.vmem [shape: f32[1,128], index: 6, kind: input, shape index: {}]   ;;  %s494_s7 = inlined_call_operand.hbm [shape: f32[16,128], index: 7, kind: output, shape index: {}]  }
   0x1   :  { %13 = vsyncpa [#allocation6], 0 }
   0x2   :  { %14 = vsyncpa [#allocation9], 0 }
   0x3   :  { %15 = vsyncpa [#allocation4], 0  ;;  %s33_s26 = sshll.u32 %s488_s1, 4  ;;  %s399_s27 = smov [#allocation5]   ;;  %s34_s26 = int_to_ptr.hbm [resolvable:$true] %s33_s26 }
   0x4   :  { %s35_s28 = sshll.u32 %s399_s27, 4  ;;  %s20_s8 = sshll.u32 %s487_s0, 4  ;;  %s36_s28 = int_to_ptr.vmem [resolvable:$true] %s35_s28  ;;  %s21_s8 = int_to_ptr.hbm [resolvable:$true] %s20_s8 }
   0x5   :  { %s400_s9 = smov 128   ;;  %s401_s10 = smov 8  }
   0x6   :  { %41 = dma.hbm_to_vmem [thread:$0]  %s34_s26, 512, %s36_s28, [#allocation6], %s400_s9, %s400_s9, %s401_s10  }
   0x7   :  { %s402_s11 = smov [#allocation2]   ;;  %s48_s1 = sshll.u32 %s490_s3, 4  ;;  %s49_s1 = int_to_ptr.hbm [resolvable:$true] %s48_s1 }
   0x8   :  { %s22_s12 = sshll.u32 %s402_s11, 4  ;;  %s63_s16 = sshll.u32 %s492_s5, 4  ;;  %s23_s12 = int_to_ptr.vmem [resolvable:$true] %s22_s12  ;;  %s64_s16 = int_to_ptr.hbm [resolvable:$true] %s63_s16 }
   0x9   :  { %28 = dma.hbm_to_vmem [thread:$0]  %s21_s8, 256, %s23_s12, [#allocation3], %s400_s9, %s400_s9, %s401_s10  }
   0xa   :  { %s403_s17 = smov [#allocation7]   ;;  %s404_s19 = smov [#allocation8]  }
   0xb   :  { %s50_s18 = sshll.u32 %s403_s17, 4  ;;  %s65_s3 = sshll.u32 %s404_s19, 4  ;;  %s51_s18 = int_to_ptr.vmem [resolvable:$true] %s50_s18  ;;  %s66_s3 = int_to_ptr.vmem [resolvable:$true] %s65_s3 }
   0xc   :  { %56 = dma.hbm_to_vmem [thread:$0]  %s49_s1, 2048, %s51_s18, [#allocation6], %s400_s9, %s400_s9, %s401_s10  }
   0xd   :  { %71 = dma.hbm_to_vmem [thread:$0]  %s64_s16, 2048, %s66_s3, [#allocation9], %s400_s9, %s400_s9, %s401_s10  }
   0xe   :  { %391 = dma.done.wait [#allocation3], 256  }
   0xf   :  { %392 = vsyncadd [#allocation3], 4294967040 }
  0x10   :  { %393 = dma.done.wait [#allocation6], 2560  }
  0x11   :  { %394 = vsyncadd [#allocation6], 4294964736 }
  0x12   :  { %395 = dma.done.wait [#allocation9], 2048  }
  0x13   :  { %396 = vsyncadd [#allocation9], 4294965248  ;;  %v95_v0 = vld [vmem:[#allocation5 + $0x18] sm:$0xff]  ;;  %v94_v1 = vld [vmem:[#allocation5 + $0x10] sm:$0xff]  ;;  %vm100_vm0 = vcmask 261120   ;;  %s405_s24 = smov [#allocation10]  }
  0x14   :  { %119 = vmatpush.msra.mxu0 %v95_v0  ;;  %v93_v2 = vld [vmem:[#allocation5 + $0x8] sm:$0xff]  ;;  %v147_v3 = vld [vmem:[#allocation7 + $0x78] sm:$0xff]  ;;  %v146_v4 = vld [vmem:[#allocation7 + $0x70] sm:$0xff]  ;;  %s226_s25 = sshll.u32 %s405_s24, 4  ;;  %s227_s25 = int_to_ptr.vmem [resolvable:$true] %s226_s25 }
  0x15   :  { %152 = vmatpush.msra.mxu1 %v147_v3  ;;  %v92_v5 = vld [vmem:[#allocation5] sm:$0xff]  ;;  %v145_v6 = vld [vmem:[#allocation7 + $0x68] sm:$0xff]  ;;  %245 = vmatpush.msra.mxu3 %v147_v3  ;;  %v90_v7 = vld [vmem:[#allocation2] sm:$0xff] }
  0x16   :  { %120 = vmatpush.msra.mxu0 %v94_v1  ;;  %v144_v8 = vld [vmem:[#allocation7 + $0x60] sm:$0xff]  ;;  %v143_v9 = vld [vmem:[#allocation7 + $0x58] sm:$0xff]  ;;  %v142_v10 = vld [vmem:[#allocation7 + $0x50] sm:$0xff] }
  0x17   :  { %153 = vmatpush.msra.mxu1 %v146_v4  ;;  %246 = vmatpush.msra.mxu3 %v146_v4  ;;  %v141_v11 = vld [vmem:[#allocation7 + $0x48] sm:$0xff]  ;;  %v91_v12 = vld [vmem:[#allocation2 + $0x8] sm:$0xff]  ;;  %v140_v13 = vld [vmem:[#allocation7 + $0x40] sm:$0xff] }
  0x18   :  { %121 = vmatpush.msra.mxu0 %v93_v2  ;;  %v139_v14 = vld [vmem:[#allocation7 + $0x38] sm:$0xff]  ;;  %v138_v15 = vld [vmem:[#allocation7 + $0x30] sm:$0xff]  ;;  %v137_v16 = vld [vmem:[#allocation7 + $0x28] sm:$0xff] }
  0x19   :  { %154 = vmatpush.msra.mxu1 %v145_v6  ;;  %247 = vmatpush.msra.mxu3 %v145_v6  ;;  %v136_v17 = vld [vmem:[#allocation7 + $0x20] sm:$0xff]  ;;  %v135_v18 = vld [vmem:[#allocation7 + $0x18] sm:$0xff]  ;;  %v134_v19 = vld [vmem:[#allocation7 + $0x10] sm:$0xff] }
  0x1a   :  { %122 = vmatpush.msra.mxu0 %v92_v5  ;;  %v133_v20 = vld [vmem:[#allocation7 + $0x8] sm:$0xff]  ;;  %v132_v21 = vld [vmem:[#allocation7] sm:$0xff]  ;;  %v192_v22 = vld [vmem:[#allocation8 + $0x78] sm:$0xff] }
  0x1b   :  { %243 = vmatmul.msk.f32.vlgmr.msra.gmra.mxu0 %vm100_vm0, %v90_v7  ;;  %155 = vmatpush.msra.mxu1 %v144_v8  ;;  %v191_v23 = vld [vmem:[#allocation8 + $0x70] sm:$0xff]  ;;  %v190_v24 = vld [vmem:[#allocation8 + $0x68] sm:$0xff]  ;;  %v189_v25 = vld [vmem:[#allocation8 + $0x60] sm:$0xff] }
  0x1c   :  { %248 = vmatpush.msra.mxu3 %v144_v8  ;;  %197 = vmatpush.msra.mxu2 %v192_v22  ;;  %v188_v26 = vld [vmem:[#allocation8 + $0x58] sm:$0xff]  ;;  %v187_v27 = vld [vmem:[#allocation8 + $0x50] sm:$0xff]  ;;  %v186_v28 = vld [vmem:[#allocation8 + $0x48] sm:$0xff] }
  0x1d   :  { %156 = vmatpush.msra.mxu1 %v143_v9  ;;  %v185_v29 = vld [vmem:[#allocation8 + $0x40] sm:$0xff]  ;;  %v184_v30 = vld [vmem:[#allocation8 + $0x38] sm:$0xff]  ;;  %v268_v31 = vld [vmem:[%s489_s2] ss:$0 sm:$0xff] }
  0x1e   :  { %249 = vmatpush.msra.mxu3 %v143_v9  ;;  %198 = vmatpush.msra.mxu2 %v191_v23  ;;  %v183_v32 = vld [vmem:[#allocation8 + $0x30] sm:$0xff]  ;;  %v182_v33 = vld [vmem:[#allocation8 + $0x28] sm:$0xff]  ;;  %v181_v36 = vld [vmem:[#allocation8 + $0x20] sm:$0xff] }
  0x1f   :  { %157 = vmatpush.msra.mxu1 %v142_v10  ;;  %v180_v38 = vld [vmem:[#allocation8 + $0x18] sm:$0xff]  ;;  %v179_v42 = vld [vmem:[#allocation8 + $0x10] sm:$0xff]  ;;  %v178_v43 = vld [vmem:[#allocation8 + $0x8] sm:$0xff] }
  0x20   :  { %250 = vmatpush.msra.mxu3 %v142_v10  ;;  %199 = vmatpush.msra.mxu2 %v190_v24  ;;  %v177_v44 = vld [vmem:[#allocation8] sm:$0xff]  ;;  %v269_v45 = vld [vmem:[%s491_s4] ss:$0 sm:$0xff]  ;;  %s228_s4 = sshll.u32 %s494_s7, 4  ;;  %s229_s4 = int_to_ptr.hbm [resolvable:$true] %s228_s4 }
  0x21   :  { %158 = vmatpush.msra.mxu1 %v141_v11  ;;  %v270_v52 = vld [vmem:[%s493_s6] ss:$0 sm:$0xff] }
  0x22   :  { %251 = vmatpush.msra.mxu3 %v141_v11  ;;  %200 = vmatpush.msra.mxu2 %v189_v25 }
  0x23   :  { %244 = vmatmul.msk.f32.gmra.mxu0 %vm100_vm0, %v91_v12  ;;  %159 = vmatpush.msra.mxu1 %v140_v13 }
  0x24   :  { %252 = vmatpush.msra.mxu3 %v140_v13  ;;  %201 = vmatpush.msra.mxu2 %v188_v26 }
  0x25   :  { %160 = vmatpush.msra.mxu1 %v139_v14 }
  0x26   :  { %253 = vmatpush.msra.mxu3 %v139_v14  ;;  %202 = vmatpush.msra.mxu2 %v187_v27 }
  0x27   :  { %161 = vmatpush.msra.mxu1 %v138_v15 }
  0x28   :  { %254 = vmatpush.msra.mxu3 %v138_v15  ;;  %203 = vmatpush.msra.mxu2 %v186_v28 }
  0x29   :  { %162 = vmatpush.msra.mxu1 %v137_v16 }
  0x2a   :  { %255 = vmatpush.msra.mxu3 %v137_v16  ;;  %204 = vmatpush.msra.mxu2 %v185_v29 }
  0x2b   :  { %163 = vmatpush.msra.mxu1 %v136_v17 }
  0x2c   :  { %256 = vmatpush.msra.mxu3 %v136_v17  ;;  %205 = vmatpush.msra.mxu2 %v184_v30 }
  0x2d   :  { %164 = vmatpush.msra.mxu1 %v135_v18 }
  0x2e   :  { %257 = vmatpush.msra.mxu3 %v135_v18  ;;  %206 = vmatpush.msra.mxu2 %v183_v32 }
  0x2f   :  { %165 = vmatpush.msra.mxu1 %v134_v19 }
  0x30   :  { %258 = vmatpush.msra.mxu3 %v134_v19  ;;  %207 = vmatpush.msra.mxu2 %v182_v33 }
  0x31   :  { %166 = vmatpush.msra.mxu1 %v133_v20 }
  0x32   :  { %259 = vmatpush.msra.mxu3 %v133_v20  ;;  %208 = vmatpush.msra.mxu2 %v181_v36 }
  0x33   :  { %167 = vmatpush.msra.mxu1 %v132_v21 }
  0x34   :  { %260 = vmatpush.msra.mxu3 %v132_v21  ;;  %209 = vmatpush.msra.mxu2 %v180_v38 }
  0x36   :  { %210 = vmatpush.msra.mxu2 %v179_v42 }
  0x38   :  { %211 = vmatpush.msra.mxu2 %v178_v43 }
  0x3a   :  { %212 = vmatpush.msra.mxu2 %v177_v44 }
  0x98   :  { %v124_v34 = vpop.f32.mrf.mxu0 }
  0x99   :  { %v125_v35 = vadd.f32 %v268_v31, %v124_v34 }
  0x9b   :  { %v130_v37 = vmax.f32 %v125_v35, 0.0 }
  0x9d   :  { %168 = vmatmul.f32.vlgmr.msra.gmra.mxu1 %v130_v37 }
  0xa0   :  { %v127_v39 = vpop.f32.mrf.mxu0 }
  0xa1   :  { %v128_v40 = vadd.f32 %v268_v31, %v127_v39 }
  0xa3   :  { %v131_v41 = vmax.f32 %v128_v40, 0.0 }
  0xa5   :  { %171 = vmatmul.f32.vlgmr.msra.gmra.mxu3 %v131_v41 }
 0x11a   :  { %v169_v46 = vpop.f32.mrf.mxu1 }
 0x11b   :  { %v170_v47 = vadd.f32 %v269_v45, %v169_v46 }
 0x11d   :  { %v175_v48 = vmax.f32 %v170_v47, 0.0 }
 0x11f   :  { %213 = vmatmul.f32.vlgmr.msra.gmra.mxu2 %v175_v48 }
 0x128   :  { %v172_v49 = vpop.f32.mrf.mxu3 }
 0x129   :  { %v173_v50 = vadd.f32 %v269_v45, %v172_v49 }
 0x12b   :  { %v176_v51 = vmax.f32 %v173_v50, 0.0 }
 0x12d   :  { %216 = vmatmul.f32.gmra.mxu2 %v176_v51 }
 0x1a2   :  { %v214_v53 = vpop.f32.mrf.mxu2 }
 0x1a3   :  { %v215_v54 = vadd.f32 %v270_v52, %v214_v53 }
 0x1a5   :  { %220 = vst [vmem:[#allocation10] sm:$0xff] %v215_v54 }
 0x1b0   :  { %v217_v55 = vpop.f32.mrf.mxu2 }
 0x1b1   :  { %v218_v56 = vadd.f32 %v270_v52, %v217_v55 }
 0x1b3   :  { %221 = vst [vmem:[#allocation10 + $0x8] sm:$0xff] %v218_v56 }
 0x1b4   :  { %234 = dma.vmem_to_hbm [thread:$0]  %s227_s25, 256, %s229_s4, [#allocation4], %s400_s9, %s400_s9, %s401_s10  }
 0x1b5   :  { %397 = dma.done.wait [#allocation4], 256  }
 0x1b6   :  { %398 = vsyncadd [#allocation4], 4294967040 }
 0x1b7   :  { %239 = vsyncpa [#allocation3], 1 }
 0x1b8   :  { %240 = vsyncpa [#allocation6], 1 }
 0x1b9   :  { %241 = vsyncpa [#allocation9], 1 }
 0x1ba   :  { %242 = vsyncpa [#allocation4], 1 }

// kernel: tpu_custom_call.1
= control target key start
LH: loop header
LB: loop body
LE: loop exit
PB: predicated region body
PF: predicated region fallthrough
CT: control target
= control target key end

     0   :  { %12 = vsyncpa [#allocation3], 0  ;;  %s487_s0 = inlined_call_operand.hbm [shape: f32[16,32], index: 0, kind: input, shape index: {}]   ;;  %s488_s1 = inlined_call_operand.hbm [shape: f32[32,128], index: 1, kind: input, shape index: {}]   ;;  %s489_s2 = inlined_call_operand.vmem [shape: f32[1,128], index: 2, kind: input, shape index: {}]   ;;  %s490_s3 = inlined_call_operand.hbm [shape: f32[128,128], index: 3, kind: input, shape index: {}]   ;;  %s491_s4 = inlined_call_operand.vmem [shape: f32[1,128], index: 4, kind: input, shape index: {}]   ;;  %s492_s5 = inlined_call_operand.hbm [shape: f32[128,128], index: 5, kind: input, shape index: {}]   ;;  %s493_s6 = inlined_call_operand.vmem [shape: f32[1,128], index: 6, kind: input, shape index: {}]   ;;  %s494_s7 = inlined_call_operand.hbm [shape: f32[16,128], index: 7, kind: output, shape index: {}]  }
   0x1   :  { %13 = vsyncpa [#allocation6], 0 }
   0x2   :  { %14 = vsyncpa [#allocation9], 0 }
   0x3   :  { %15 = vsyncpa [#allocation4], 0  ;;  %s33_s26 = sshll.u32 %s488_s1, 4  ;;  %s399_s27 = smov [#allocation5]   ;;  %s34_s26 = int_to_ptr.hbm [resolvable:$true] %s33_s26 }
   0x4   :  { %s35_s28 = sshll.u32 %s399_s27, 4  ;;  %s20_s8 = sshll.u32 %s487_s0, 4  ;;  %s36_s28 = int_to_ptr.vmem [resolvable:$true] %s35_s28  ;;  %s21_s8 = int_to_ptr.hbm [resolvable:$true] %s20_s8 }
   0x5   :  { %s400_s9 = smov 128   ;;  %s401_s10 = smov 8  }
   0x6   :  { %41 = dma.hbm_to_vmem [thread:$0]  %s34_s26, 512, %s36_s28, [#allocation6], %s400_s9, %s400_s9, %s401_s10  }
   0x7   :  { %s402_s11 = smov [#allocation2]   ;;  %s48_s1 = sshll.u32 %s490_s3, 4  ;;  %s49_s1 = int_to_ptr.hbm [resolvable:$true] %s48_s1 }
   0x8   :  { %s22_s12 = sshll.u32 %s402_s11, 4  ;;  %s63_s16 = sshll.u32 %s492_s5, 4  ;;  %s23_s12 = int_to_ptr.vmem [resolvable:$true] %s22_s12  ;;  %s64_s16 = int_to_ptr.hbm [resolvable:$true] %s63_s16 }
   0x9   :  { %28 = dma.hbm_to_vmem [thread:$0]  %s21_s8, 256, %s23_s12, [#allocation3], %s400_s9, %s400_s9, %s401_s10  }
   0xa   :  { %s403_s17 = smov [#allocation7]   ;;  %s404_s19 = smov [#allocation8]  }
   0xb   :  { %s50_s18 = sshll.u32 %s403_s17, 4  ;;  %s65_s3 = sshll.u32 %s404_s19, 4  ;;  %s51_s18 = int_to_ptr.vmem [resolvable:$true] %s50_s18  ;;  %s66_s3 = int_to_ptr.vmem [resolvable:$true] %s65_s3 }
   0xc   :  { %56 = dma.hbm_to_vmem [thread:$0]  %s49_s1, 2048, %s51_s18, [#allocation6], %s400_s9, %s400_s9, %s401_s10  }
   0xd   :  { %71 = dma.hbm_to_vmem [thread:$0]  %s64_s16, 2048, %s66_s3, [#allocation9], %s400_s9, %s400_s9, %s401_s10  }
   0xe   :  { %391 = dma.done.wait [#allocation3], 256  }
   0xf   :  { %392 = vsyncadd [#allocation3], 4294967040 }
  0x10   :  { %393 = dma.done.wait [#allocation6], 2560  }
  0x11   :  { %394 = vsyncadd [#allocation6], 4294964736 }
  0x12   :  { %395 = dma.done.wait [#allocation9], 2048  }
  0x13   :  { %396 = vsyncadd [#allocation9], 4294965248  ;;  %v95_v0 = vld [vmem:[#allocation5 + $0x18] sm:$0xff]  ;;  %v94_v1 = vld [vmem:[#allocation5 + $0x10] sm:$0xff]  ;;  %vm100_vm0 = vcmask 261120   ;;  %s405_s24 = smov [#allocation10]  }
  0x14   :  { %119 = vmatpush.msra.mxu0 %v95_v0  ;;  %v93_v2 = vld [vmem:[#allocation5 + $0x8] sm:$0xff]  ;;  %v147_v3 = vld [vmem:[#allocation7 + $0x78] sm:$0xff]  ;;  %v146_v4 = vld [vmem:[#allocation7 + $0x70] sm:$0xff]  ;;  %s226_s25 = sshll.u32 %s405_s24, 4  ;;  %s227_s25 = int_to_ptr.vmem [resolvable:$true] %s226_s25 }
  0x15   :  { %152 = vmatpush.msra.mxu1 %v147_v3  ;;  %v92_v5 = vld [vmem:[#allocation5] sm:$0xff]  ;;  %v145_v6 = vld [vmem:[#allocation7 + $0x68] sm:$0xff]  ;;  %245 = vmatpush.msra.mxu3 %v147_v3  ;;  %v90_v7 = vld [vmem:[#allocation2] sm:$0xff] }
  0x16   :  { %120 = vmatpush.msra.mxu0 %v94_v1  ;;  %v144_v8 = vld [vmem:[#allocation7 + $0x60] sm:$0xff]  ;;  %v143_v9 = vld [vmem:[#allocation7 + $0x58] sm:$0xff]  ;;  %v142_v10 = vld [vmem:[#allocation7 + $0x50] sm:$0xff] }
  0x17   :  { %153 = vmatpush.msra.mxu1 %v146_v4  ;;  %246 = vmatpush.msra.mxu3 %v146_v4  ;;  %v141_v11 = vld [vmem:[#allocation7 + $0x48] sm:$0xff]  ;;  %v91_v12 = vld [vmem:[#allocation2 + $0x8] sm:$0xff]  ;;  %v140_v13 = vld [vmem:[#allocation7 + $0x40] sm:$0xff] }
  0x18   :  { %121 = vmatpush.msra.mxu0 %v93_v2  ;;  %v139_v14 = vld [vmem:[#allocation7 + $0x38] sm:$0xff]  ;;  %v138_v15 = vld [vmem:[#allocation7 + $0x30] sm:$0xff]  ;;  %v137_v16 = vld [vmem:[#allocation7 + $0x28] sm:$0xff] }
  0x19   :  { %154 = vmatpush.msra.mxu1 %v145_v6  ;;  %247 = vmatpush.msra.mxu3 %v145_v6  ;;  %v136_v17 = vld [vmem:[#allocation7 + $0x20] sm:$0xff]  ;;  %v135_v18 = vld [vmem:[#allocation7 + $0x18] sm:$0xff]  ;;  %v134_v19 = vld [vmem:[#allocation7 + $0x10] sm:$0xff] }
  0x1a   :  { %122 = vmatpush.msra.mxu0 %v92_v5  ;;  %v133_v20 = vld [vmem:[#allocation7 + $0x8] sm:$0xff]  ;;  %v132_v21 = vld [vmem:[#allocation7] sm:$0xff]  ;;  %v192_v22 = vld [vmem:[#allocation8 + $0x78] sm:$0xff] }
  0x1b   :  { %243 = vmatmul.msk.f32.vlgmr.msra.gmra.mxu0 %vm100_vm0, %v90_v7  ;;  %155 = vmatpush.msra.mxu1 %v144_v8  ;;  %v191_v23 = vld [vmem:[#allocation8 + $0x70] sm:$0xff]  ;;  %v190_v24 = vld [vmem:[#allocation8 + $0x68] sm:$0xff]  ;;  %v189_v25 = vld [vmem:[#allocation8 + $0x60] sm:$0xff] }
  0x1c   :  { %248 = vmatpush.msra.mxu3 %v144_v8  ;;  %197 = vmatpush.msra.mxu2 %v192_v22  ;;  %v188_v26 = vld [vmem:[#allocation8 + $0x58] sm:$0xff]  ;;  %v187_v27 = vld [vmem:[#allocation8 + $0x50] sm:$0xff]  ;;  %v186_v28 = vld [vmem:[#allocation8 + $0x48] sm:$0xff] }
  0x1d   :  { %156 = vmatpush.msra.mxu1 %v143_v9  ;;  %v185_v29 = vld [vmem:[#allocation8 + $0x40] sm:$0xff]  ;;  %v184_v30 = vld [vmem:[#allocation8 + $0x38] sm:$0xff]  ;;  %v268_v31 = vld [vmem:[%s489_s2] ss:$0 sm:$0xff] }
  0x1e   :  { %249 = vmatpush.msra.mxu3 %v143_v9  ;;  %198 = vmatpush.msra.mxu2 %v191_v23  ;;  %v183_v32 = vld [vmem:[#allocation8 + $0x30] sm:$0xff]  ;;  %v182_v33 = vld [vmem:[#allocation8 + $0x28] sm:$0xff]  ;;  %v181_v36 = vld [vmem:[#allocation8 + $0x20] sm:$0xff] }
  0x1f   :  { %157 = vmatpush.msra.mxu1 %v142_v10  ;;  %v180_v38 = vld [vmem:[#allocation8 + $0x18] sm:$0xff]  ;;  %v179_v42 = vld [vmem:[#allocation8 + $0x10] sm:$0xff]  ;;  %v178_v43 = vld [vmem:[#allocation8 + $0x8] sm:$0xff] }
  0x20   :  { %250 = vmatpush.msra.mxu3 %v142_v10  ;;  %199 = vmatpush.msra.mxu2 %v190_v24  ;;  %v177_v44 = vld [vmem:[#allocation8] sm:$0xff]  ;;  %v269_v45 = vld [vmem:[%s491_s4] ss:$0 sm:$0xff]  ;;  %s228_s4 = sshll.u32 %s494_s7, 4  ;;  %s229_s4 = int_to_ptr.hbm [resolvable:$true] %s228_s4 }
  0x21   :  { %158 = vmatpush.msra.mxu1 %v141_v11  ;;  %v270_v52 = vld [vmem:[%s493_s6] ss:$0 sm:$0xff] }
  0x22   :  { %251 = vmatpush.msra.mxu3 %v141_v11  ;;  %200 = vmatpush.msra.mxu2 %v189_v25 }
  0x23   :  { %244 = vmatmul.msk.f32.gmra.mxu0 %vm100_vm0, %v91_v12  ;;  %159 = vmatpush.msra.mxu1 %v140_v13 }
  0x24   :  { %252 = vmatpush.msra.mxu3 %v140_v13  ;;  %201 = vmatpush.msra.mxu2 %v188_v26 }
  0x25   :  { %160 = vmatpush.msra.mxu1 %v139_v14 }
  0x26   :  { %253 = vmatpush.msra.mxu3 %v139_v14  ;;  %202 = vmatpush.msra.mxu2 %v187_v27 }
  0x27   :  { %161 = vmatpush.msra.mxu1 %v138_v15 }
  0x28   :  { %254 = vmatpush.msra.mxu3 %v138_v15  ;;  %203 = vmatpush.msra.mxu2 %v186_v28 }
  0x29   :  { %162 = vmatpush.msra.mxu1 %v137_v16 }
  0x2a   :  { %255 = vmatpush.msra.mxu3 %v137_v16  ;;  %204 = vmatpush.msra.mxu2 %v185_v29 }
  0x2b   :  { %163 = vmatpush.msra.mxu1 %v136_v17 }
  0x2c   :  { %256 = vmatpush.msra.mxu3 %v136_v17  ;;  %205 = vmatpush.msra.mxu2 %v184_v30 }
  0x2d   :  { %164 = vmatpush.msra.mxu1 %v135_v18 }
  0x2e   :  { %257 = vmatpush.msra.mxu3 %v135_v18  ;;  %206 = vmatpush.msra.mxu2 %v183_v32 }
  0x2f   :  { %165 = vmatpush.msra.mxu1 %v134_v19 }
  0x30   :  { %258 = vmatpush.msra.mxu3 %v134_v19  ;;  %207 = vmatpush.msra.mxu2 %v182_v33 }
  0x31   :  { %166 = vmatpush.msra.mxu1 %v133_v20 }
  0x32   :  { %259 = vmatpush.msra.mxu3 %v133_v20  ;;  %208 = vmatpush.msra.mxu2 %v181_v36 }
  0x33   :  { %167 = vmatpush.msra.mxu1 %v132_v21 }
  0x34   :  { %260 = vmatpush.msra.mxu3 %v132_v21  ;;  %209 = vmatpush.msra.mxu2 %v180_v38 }
  0x36   :  { %210 = vmatpush.msra.mxu2 %v179_v42 }
  0x38   :  { %211 = vmatpush.msra.mxu2 %v178_v43 }
  0x3a   :  { %212 = vmatpush.msra.mxu2 %v177_v44 }
  0x98   :  { %v124_v34 = vpop.f32.mrf.mxu0 }
  0x99   :  { %v125_v35 = vadd.f32 %v268_v31, %v124_v34 }
  0x9b   :  { %v130_v37 = vmax.f32 %v125_v35, 0.0 }
  0x9d   :  { %168 = vmatmul.f32.vlgmr.msra.gmra.mxu1 %v130_v37 }
  0xa0   :  { %v127_v39 = vpop.f32.mrf.mxu0 }
  0xa1   :  { %v128_v40 = vadd.f32 %v268_v31, %v127_v39 }
  0xa3   :  { %v131_v41 = vmax.f32 %v128_v40, 0.0 }
  0xa5   :  { %171 = vmatmul.f32.vlgmr.msra.gmra.mxu3 %v131_v41 }
 0x11a   :  { %v169_v46 = vpop.f32.mrf.mxu1 }
 0x11b   :  { %v170_v47 = vadd.f32 %v269_v45, %v169_v46 }
 0x11d   :  { %v175_v48 = vmax.f32 %v170_v47, 0.0 }
 0x11f   :  { %213 = vmatmul.f32.vlgmr.msra.gmra.mxu2 %v175_v48 }
 0x128   :  { %v172_v49 = vpop.f32.mrf.mxu3 }
 0x129   :  { %v173_v50 = vadd.f32 %v269_v45, %v172_v49 }
 0x12b   :  { %v176_v51 = vmax.f32 %v173_v50, 0.0 }
 0x12d   :  { %216 = vmatmul.f32.gmra.mxu2 %v176_v51 }
 0x1a2   :  { %v214_v53 = vpop.f32.mrf.mxu2 }
 0x1a3   :  { %v215_v54 = vadd.f32 %v270_v52, %v214_v53 }
 0x1a5   :  { %220 = vst [vmem:[#allocation10] sm:$0xff] %v215_v54 }
 0x1b0   :  { %v217_v55 = vpop.f32.mrf.mxu2 }
 0x1b1   :  { %v218_v56 = vadd.f32 %v270_v52, %v217_v55 }
 0x1b3   :  { %221 = vst [vmem:[#allocation10 + $0x8] sm:$0xff] %v218_v56 }
 0x1b4   :  { %234 = dma.vmem_to_hbm [thread:$0]  %s227_s25, 256, %s229_s4, [#allocation4], %s400_s9, %s400_s9, %s401_s10  }
 0x1b5   :  { %397 = dma.done.wait [#allocation4], 256  }
 0x1b6   :  { %398 = vsyncadd [#allocation4], 4294967040 }
 0x1b7   :  { %239 = vsyncpa [#allocation3], 1 }
 0x1b8   :  { %240 = vsyncpa [#allocation6], 1 }
 0x1b9   :  { %241 = vsyncpa [#allocation9], 1 }
 0x1ba   :  { %242 = vsyncpa [#allocation4], 1 }

</bundles_post_ra>
